<compile_context>
chip_gen: v7x
topology: tpu7x:2x2x1
jax: 0.10.0
libtpu: 0.0.40
codegen_flags: <defaults>
</compile_context>

<pallas_src>
import jax
import jax.numpy as jnp
from jax.experimental import pallas as pl
from jax.experimental.pallas import tpu as pltpu


def _make_double_q_kernel(n_layers: int):
  """Kernel for the merged (Q1 ++ Q2) MLP, computed feature-major (batch in lanes)."""

  def kernel(*refs):
    x_ref = refs[0]                                   # (D, TM)  compute dtype
    w_refs = refs[1:1 + n_layers]                     # (2H_out, 2H_in) per layer
    b_refs = refs[1 + n_layers:1 + 2 * n_layers]      # (2H_out, 1) f32 per layer
    out_ref = refs[1 + 2 * n_layers]                  # (3, TM) f32: rows = q1, q2, min

    h = x_ref[...]
    for li in range(n_layers):
      # One MXU dot per layer for BOTH Q-nets (layer-1 output-concat, later
      # layers block-diagonal); f32 accumulation.
      h = jnp.dot(w_refs[li][...], h, preferred_element_type=jnp.float32)
      h = h + b_refs[li][...]                         # (2H, 1) bias broadcasts over lanes
      if li < n_layers - 1:
        h = jnp.maximum(h, 0.0).astype(x_ref.dtype)   # ReLU in f32, cast back for MXU

    # h is (2, TM) f32: row 0 = q1, row 1 = q2.  Lane-dense stores (batch = lanes).
    out_ref[0:2, :] = h
    out_ref[2:3, :] = jnp.min(h, axis=0, keepdims=True)

  return kernel


def _merge_double_q_params(q1_layers, q2_layers, compute_dtype):
  """Stack Q1/Q2 into one net.

  Layer 1: output-concat of the two weight matrices; later layers:
  block-diagonal.  Returns feature-major (transposed) weights (compute_dtype)
  and biases (f32, column vectors) for lane-dense batch compute.
  """
  w_list, b_list = [], []
  for li, ((w1, b1), (w2, b2)) in enumerate(zip(q1_layers, q2_layers)):
    w1 = w1.astype(jnp.float32)
    w2 = w2.astype(jnp.float32)
    if li == 0:
      w = jnp.concatenate([w1, w2], axis=1)                          # (D, 2H1)
    else:
      top = jnp.concatenate(
          [w1, jnp.zeros((w1.shape[0], w2.shape[1]), jnp.float32)], axis=1)
      bot = jnp.concatenate(
          [jnp.zeros((w2.shape[0], w1.shape[1]), jnp.float32), w2], axis=1)
      w = jnp.concatenate([top, bot], axis=0)                        # (2Hin, 2Hout)
    b = jnp.concatenate([b1.astype(jnp.float32),
                         b2.astype(jnp.float32)], axis=1)            # (1, 2Hout)
    w_list.append(w.T.astype(compute_dtype))                         # (2Hout, 2Hin)
    b_list.append(b.T)                                               # (2Hout, 1) f32
  return w_list, b_list


def option_double_q_all(obs, prev_lat, prev_act, lat, act, params, *,
                        use_prev_action=True, block_m=1024,
                        compute_dtype=jnp.bfloat16):
  """Single Pallas launch -> (q1, q2, min(q1, q2)), each (B, 1) float32."""
  if use_prev_action:
    parts = [obs, prev_lat, prev_act, lat, act]
  else:
    parts = [obs, prev_lat, lat, act]

  # One cheap XLA concat + transpose; the kernel sees a single lane-dense (D, B) slab.
  x = jnp.concatenate([p.astype(jnp.float32) for p in parts], axis=-1)
  B, D = x.shape
  x_t = x.T.astype(compute_dtype)                                    # (D, B)

  w_list, b_list = _merge_double_q_params(params["q1"], params["q2"], compute_dtype)
  n_layers = len(w_list)

  # Batch tile: big tiles amortize per-grid-step overhead; >= 2 tiles once
  # B > 128 so both v7x TensorCores get work under the "parallel" batch axis.
  # Lane-dim blocks must be a multiple of 128 unless they span the whole batch.
  block_m = max(128, (block_m // 128) * 128)
  if B <= 128:
    tm = B
  else:
    tm = min(block_m, 128 * pl.cdiv(pl.cdiv(B, 2), 128))
  grid = (pl.cdiv(B, tm),)

  in_specs = [pl.BlockSpec((D, tm), lambda i: (0, i))]
  # Weights/biases: full-array blocks, constant index_map -> DMA'd once,
  # VMEM-resident across all grid steps.
  for w in w_list:
    in_specs.append(pl.BlockSpec(tuple(w.shape), lambda i: (0, 0)))
  for b in b_list:
    in_specs.append(pl.BlockSpec(tuple(b.shape), lambda i: (0, 0)))

  out = pl.pallas_call(
      _make_double_q_kernel(n_layers),
      out_shape=jax.ShapeDtypeStruct((3, B), jnp.float32),
      grid=grid,
      in_specs=in_specs,
      out_specs=pl.BlockSpec((3, tm), lambda i: (0, i)),
      compiler_params=pltpu.CompilerParams(
          dimension_semantics=("parallel",)),
  )(x_t, *w_list, *b_list)

  q1 = out[0][:, None]
  q2 = out[1][:, None]
  q_min = out[2][:, None]
  return q1, q2, q_min


def option_double_q_forward(obs, prev_lat, prev_act, lat, act, params, *,
                            both=False, use_prev_action=True, block_m=1024,
                            compute_dtype=jnp.bfloat16):
  """Module-faithful API: (q1, q2) if both else min(q1, q2). One kernel launch."""
  q1, q2, q_min = option_double_q_all(
      obs, prev_lat, prev_act, lat, act, params,
      use_prev_action=use_prev_action, block_m=block_m,
      compute_dtype=compute_dtype)
  if both:
    return q1, q2
  return q_min


def init_mlp_params(key, input_dim, hidden_dims, output_dim):
  """Deterministic synthetic init (stands in for weight_init / orthogonal)."""
  dims = [input_dim] + list(hidden_dims) + [output_dim]
  layers = []
  for i in range(len(dims) - 1):
    key, kw, kb = jax.random.split(key, 3)
    w = jax.random.normal(kw, (dims[i], dims[i + 1]), jnp.float32) / jnp.sqrt(dims[i])
    b = 0.01 * jax.random.normal(kb, (1, dims[i + 1]), jnp.float32)
    layers.append((w, b))
  return layers


if __name__ == "__main__":
  # Small config consistent with the module:
  #   obs_dim=16, action_dim=4, lat_dim=8, use_prev_action=True,
  #   extra_option_dim=0, extra_action_dim=0, hidden_critic=(32, 32), batch=2.
  obs_dim, action_dim, lat_dim = 16, 4, 8
  hidden_critic = (32, 32)
  batch = 2
  input_dim = obs_dim + lat_dim + action_dim + lat_dim + action_dim  # 40

  key = jax.random.PRNGKey(0)
  ks = jax.random.split(key, 7)
  obs = jax.random.normal(ks[0], (batch, obs_dim), jnp.float32)
  prev_lat = jax.nn.one_hot(
      jax.random.randint(ks[1], (batch,), 0, lat_dim), lat_dim, dtype=jnp.float32)
  prev_act = jax.random.normal(ks[2], (batch, action_dim), jnp.float32)
  lat = jax.nn.one_hot(
      jax.random.randint(ks[3], (batch,), 0, lat_dim), lat_dim, dtype=jnp.float32)
  act = jax.random.normal(ks[4], (batch, action_dim), jnp.float32)

  params = {
      "q1": init_mlp_params(ks[5], input_dim, hidden_critic, 1),
      "q2": init_mlp_params(ks[6], input_dim, hidden_critic, 1),
  }

  # Single kernel invocation produces q1, q2 AND min(q1, q2) (never launch
  # twice for both=True / both=False).
  q1, q2, q_min = option_double_q_all(obs, prev_lat, prev_act, lat, act, params)
  jax.block_until_ready((q1, q2, q_min))

  # Pure-JAX f32 reference (HIGHEST matmul precision so the reference itself is
  # accurate).  Kernel uses bf16 MXU inputs with f32 accumulation, so compare
  # with a bf16-appropriate tolerance.
  def ref_mlp(x, layers):
    h = x
    for i, (w, b) in enumerate(layers):
      h = jnp.dot(h, w, precision=jax.lax.Precision.HIGHEST) + b
      if i < len(layers) - 1:
        h = jnp.maximum(h, 0.0)
    return h

  x = jnp.concatenate([obs, prev_lat, prev_act, lat, act], axis=-1)
  ref_q1 = ref_mlp(x, params["q1"])
  ref_q2 = ref_mlp(x, params["q2"])
  tol = dict(atol=5e-2, rtol=5e-2)
  assert jnp.allclose(q1, ref_q1, **tol), "q1 mismatch"
  assert jnp.allclose(q2, ref_q2, **tol), "q2 mismatch"
  assert jnp.allclose(q_min, jnp.minimum(ref_q1, ref_q2), **tol), "min mismatch"

  print("KERNEL_OK")
</pallas_src>

<mosaic_0001>
module attributes {stable_mosaic.version = 11 : i64} {
  func.func @kernel(%arg0: i32, %arg1: memref<40x2xbf16, #tpu.memory_space<vmem>>, %arg2: memref<64x40xbf16, #tpu.memory_space<vmem>>, %arg3: memref<64x64xbf16, #tpu.memory_space<vmem>>, %arg4: memref<2x64xbf16, #tpu.memory_space<vmem>>, %arg5: memref<64x1xf32, #tpu.memory_space<vmem>>, %arg6: memref<64x1xf32, #tpu.memory_space<vmem>>, %arg7: memref<2x1xf32, #tpu.memory_space<vmem>>, %arg8: memref<3x2xf32, #tpu.memory_space<vmem>>) attributes {dimension_semantics = [#tpu.dimension_semantics<parallel>], iteration_bounds = array<i64: 1>, scalar_prefetch = 0 : i64, scratch_operands = 0 : i64, tpu.core_type = #tpu.core_type<tc>, window_params = [{transform_indices = @transform_0, window_bounds = array<i64: 40, 2>}, {pipeline_mode = #tpu.pipeline_mode<synchronous>, transform_indices = @transform_1, window_bounds = array<i64: 64, 40>}, {pipeline_mode = #tpu.pipeline_mode<synchronous>, transform_indices = @transform_2, window_bounds = array<i64: 64, 64>}, {pipeline_mode = #tpu.pipeline_mode<synchronous>, transform_indices = @transform_3, window_bounds = array<i64: 2, 64>}, {pipeline_mode = #tpu.pipeline_mode<synchronous>, transform_indices = @transform_4, window_bounds = array<i64: 64, 1>}, {pipeline_mode = #tpu.pipeline_mode<synchronous>, transform_indices = @transform_5, window_bounds = array<i64: 64, 1>}, {pipeline_mode = #tpu.pipeline_mode<synchronous>, transform_indices = @transform_6, window_bounds = array<i64: 2, 1>}, {transform_indices = @transform_7, window_bounds = array<i64: 3, 2>}]} {
    %c0 = arith.constant 0 : index
    %c0_0 = arith.constant 0 : index
    %0 = vector.load %arg1[%c0, %c0_0] : memref<40x2xbf16, #tpu.memory_space<vmem>>, vector<40x2xbf16>
    %c0_1 = arith.constant 0 : index
    %c0_2 = arith.constant 0 : index
    %1 = vector.load %arg2[%c0_1, %c0_2] : memref<64x40xbf16, #tpu.memory_space<vmem>>, vector<64x40xbf16>
    %cst = arith.constant dense<0.000000e+00> : vector<64x2xf32>
    %2 = tpu.matmul %1, %0, %cst {dimension_numbers = #tpu.dot_dimension_numbers<[1], [0], [0], [1], [0, 0, 1, 1], [], []>} : vector<64x40xbf16>, vector<40x2xbf16>, vector<64x2xf32> -> vector<64x2xf32>
    %c0_3 = arith.constant 0 : index
    %c0_4 = arith.constant 0 : index
    %3 = vector.load %arg5[%c0_3, %c0_4] : memref<64x1xf32, #tpu.memory_space<vmem>>, vector<64x1xf32>
    %4 = vector.broadcast %3 : vector<64x1xf32> to vector<64x2xf32>
    %5 = arith.addf %2, %4 : vector<64x2xf32>
    %cst_5 = arith.constant 0.000000e+00 : f32
    %6 = vector.broadcast %cst_5 : f32 to vector<64x2xf32>
    %7 = arith.maximumf %5, %6 : vector<64x2xf32>
    %8 = arith.truncf %7 : vector<64x2xf32> to vector<64x2xbf16>
    %c0_6 = arith.constant 0 : index
    %c0_7 = arith.constant 0 : index
    %9 = vector.load %arg3[%c0_6, %c0_7] : memref<64x64xbf16, #tpu.memory_space<vmem>>, vector<64x64xbf16>
    %cst_8 = arith.constant dense<0.000000e+00> : vector<64x2xf32>
    %10 = tpu.matmul %9, %8, %cst_8 {dimension_numbers = #tpu.dot_dimension_numbers<[1], [0], [0], [1], [0, 0, 1, 1], [], []>} : vector<64x64xbf16>, vector<64x2xbf16>, vector<64x2xf32> -> vector<64x2xf32>
    %c0_9 = arith.constant 0 : index
    %c0_10 = arith.constant 0 : index
    %11 = vector.load %arg6[%c0_9, %c0_10] : memref<64x1xf32, #tpu.memory_space<vmem>>, vector<64x1xf32>
    %12 = vector.broadcast %11 : vector<64x1xf32> to vector<64x2xf32>
    %13 = arith.addf %10, %12 : vector<64x2xf32>
    %cst_11 = arith.constant 0.000000e+00 : f32
    %14 = vector.broadcast %cst_11 : f32 to vector<64x2xf32>
    %15 = arith.maximumf %13, %14 : vector<64x2xf32>
    %16 = arith.truncf %15 : vector<64x2xf32> to vector<64x2xbf16>
    %c0_12 = arith.constant 0 : index
    %c0_13 = arith.constant 0 : index
    %17 = vector.load %arg4[%c0_12, %c0_13] : memref<2x64xbf16, #tpu.memory_space<vmem>>, vector<2x64xbf16>
    %cst_14 = arith.constant dense<0.000000e+00> : vector<2x2xf32>
    %18 = tpu.matmul %17, %16, %cst_14 {dimension_numbers = #tpu.dot_dimension_numbers<[1], [0], [0], [1], [0, 0, 1, 1], [], []>} : vector<2x64xbf16>, vector<64x2xbf16>, vector<2x2xf32> -> vector<2x2xf32>
    %c0_15 = arith.constant 0 : index
    %c0_16 = arith.constant 0 : index
    %19 = vector.load %arg7[%c0_15, %c0_16] : memref<2x1xf32, #tpu.memory_space<vmem>>, vector<2x1xf32>
    %20 = vector.broadcast %19 : vector<2x1xf32> to vector<2x2xf32>
    %21 = arith.addf %18, %20 : vector<2x2xf32>
    %c0_17 = arith.constant 0 : index
    %c0_18 = arith.constant 0 : index
    %22 = vector.load %arg8[%c0_17, %c0_18] : memref<3x2xf32, #tpu.memory_space<vmem>>, vector<2x2xf32>
    tpu.vector_store %arg8[%c0_17, %c0_18], %21 {strides = array<i32>} : memref<3x2xf32, #tpu.memory_space<vmem>>, vector<2x2xf32>,
    %cst_19 = arith.constant dense<0x7F800000> : vector<2xf32>
    %23 = vector.multi_reduction <minimumf>, %21, %cst_19 [0] : vector<2x2xf32> to vector<2xf32>
    %24 = vector.shape_cast %23 : vector<2xf32> to vector<1x2xf32>
    %c2 = arith.constant 2 : index
    %c0_20 = arith.constant 0 : index
    %25 = vector.load %arg8[%c2, %c0_20] : memref<3x2xf32, #tpu.memory_space<vmem>>, vector<1x2xf32>
    tpu.vector_store %arg8[%c2, %c0_20], %24 {strides = array<i32>} : memref<3x2xf32, #tpu.memory_space<vmem>>, vector<1x2xf32>,
    return
  }
  func.func @transform_0(%arg0: i32) -> (i32, i32) {
    %c0_i32 = arith.constant 0 : i32
    %c0_i32_0 = arith.constant 0 : i32
    return %c0_i32, %arg0 : i32, i32
  }
  func.func @transform_1(%arg0: i32) -> (i32, i32) {
    %c0_i32 = arith.constant 0 : i32
    %c0_i32_0 = arith.constant 0 : i32
    %c0_i32_1 = arith.constant 0 : i32
    return %c0_i32, %c0_i32_0 : i32, i32
  }
  func.func @transform_2(%arg0: i32) -> (i32, i32) {
    %c0_i32 = arith.constant 0 : i32
    %c0_i32_0 = arith.constant 0 : i32
    %c0_i32_1 = arith.constant 0 : i32
    return %c0_i32, %c0_i32_0 : i32, i32
  }
  func.func @transform_3(%arg0: i32) -> (i32, i32) {
    %c0_i32 = arith.constant 0 : i32
    %c0_i32_0 = arith.constant 0 : i32
    %c0_i32_1 = arith.constant 0 : i32
    return %c0_i32, %c0_i32_0 : i32, i32
  }
  func.func @transform_4(%arg0: i32) -> (i32, i32) {
    %c0_i32 = arith.constant 0 : i32
    %c0_i32_0 = arith.constant 0 : i32
    %c0_i32_1 = arith.constant 0 : i32
    return %c0_i32, %c0_i32_0 : i32, i32
  }
  func.func @transform_5(%arg0: i32) -> (i32, i32) {
    %c0_i32 = arith.constant 0 : i32
    %c0_i32_0 = arith.constant 0 : i32
    %c0_i32_1 = arith.constant 0 : i32
    return %c0_i32, %c0_i32_0 : i32, i32
  }
  func.func @transform_6(%arg0: i32) -> (i32, i32) {
    %c0_i32 = arith.constant 0 : i32
    %c0_i32_0 = arith.constant 0 : i32
    %c0_i32_1 = arith.constant 0 : i32
    return %c0_i32, %c0_i32_0 : i32, i32
  }
  func.func @transform_7(%arg0: i32) -> (i32, i32) {
    %c0_i32 = arith.constant 0 : i32
    %c0_i32_0 = arith.constant 0 : i32
    return %c0_i32, %arg0 : i32, i32
  }
}

</mosaic_0001>

<bundles_post_ra>
// kernel: tpu_custom_call.1
= control target key start
LH: loop header
LB: loop body
LE: loop exit
PB: predicated region body
PF: predicated region fallthrough
CT: control target
= control target key end

     0   :  { %v547_v1 = vmov 0   ;;  %vm123_vm0 = vcmask 326656   ;;  %vm136_vm1 = vcmask 1043456   ;;  %vm293_vm2 = vcmask 523264   ;;  %s692_s0 = inlined_call_operand.vmem [shape: bf16[40,2], index: 0, kind: input, shape index: {}]   ;;  %s693_s1 = inlined_call_operand.vmem [shape: bf16[64,40], index: 1, kind: input, shape index: {}]   ;;  %s694_s4 = inlined_call_operand.vmem [shape: f32[64,1], index: 4, kind: input, shape index: {}]   ;;  %s695_s5 = inlined_call_operand.vmem [shape: f32[64,1], index: 5, kind: input, shape index: {}]   ;;  %s696_s6 = inlined_call_operand.vmem [shape: f32[2,1], index: 6, kind: input, shape index: {}]   ;;  %s697_s2 = inlined_call_operand.vmem [shape: bf16[64,64], index: 2, kind: input, shape index: {}]   ;;  %s698_s3 = inlined_call_operand.vmem [shape: bf16[2,64], index: 3, kind: input, shape index: {}]   ;;  %s699_s7 = inlined_call_operand.vmem [shape: f32[3,2], index: 7, kind: output, shape index: {}]  }
   0x1   :  { %v536_v0 = vld [vmem:[%s692_s0] sm:$0xff]   ;;  %534 = vset.pattern.permute.xlu0 %v547_v1  ;;  %535 = vset.pattern.permute.xlu1 %v547_v1  ;;  %v537_v2 = vld [vmem:[%s692_s0 + $0x8] sm:$0xff]   ;;  %v538_v4 = vld [vmem:[%s692_s0 + $0x10] ss:$0 sps:$4 sm:$0xff]   ;;  %vm549_vm3 = vmmov 0   ;;  %vm433_vm4 = vcmask 9216  }
   0x2   :  { %488 = vmatprep.subr.bf16.mxu0 %v536_v0  ;;  %v539_v3 = vld [vmem:[%s693_s1] sm:$0xff]   ;;  %v42_v6 = vld [vmem:[%s694_s4 + $0x10] sm:$0xff]  ;;  %v138_v7 = vsel %vm136_vm1, %v538_v4, 0  ;;  %v41_v8 = vld [vmem:[%s694_s4 + $0x8] sm:$0xff]  ;;  %vm442_vm5 = vcmask 8192  }
   0x3   :  { %489 = vmatpush3.bf16.msra.mxu0 %v536_v0  ;;  %494 = vmatprep.mubr.msk.bf16.mxu0 %vm123_vm0, %v539_v3  ;;  %v40_v5 = vld [vmem:[%s694_s4] sm:$0xff]  ;;  %v43_v9 = vld [vmem:[%s694_s4 + $0x18] sm:$0xff]  ;;  %v540_v10 = vld [vmem:[%s693_s1 + $0x8] sm:$0xff]  }
   0x4   :  { %490 = vmatprep.subr.bf16.mxu0 %v537_v2  ;;  %50 = vperm.xlu0 %534, %v40_v5   ;;  %v541_v11 = vld [vmem:[%s693_s1 + $0x10] sm:$0xff]   ;;  %v44_v12 = vld [vmem:[%s694_s4 + $0x20] sm:$0xff]  ;;  %v45_v13 = vld [vmem:[%s694_s4 + $0x28] sm:$0xff] }
   0x5   :  { %60 = vperm.xlu1 %535, %v42_v6   ;;  %v46_v14 = vld [vmem:[%s694_s4 + $0x30] sm:$0xff]  ;;  %v47_v15 = vld [vmem:[%s694_s4 + $0x38] sm:$0xff]  ;;  %v225_v17 = vld [vmem:[%s695_s5] sm:$0xff] }
   0x6   :  { %v542_v16 = vld [vmem:[%s693_s1 + $0x18] sm:$0xff]   ;;  %v226_v18 = vld [vmem:[%s695_s5 + $0x8] sm:$0xff]  ;;  %v227_v19 = vld [vmem:[%s695_s5 + $0x10] sm:$0xff] }
   0x7   :  { %491 = vmatpush3.bf16.msra.mxu0 %v537_v2  ;;  %v228_v20 = vld [vmem:[%s695_s5 + $0x18] sm:$0xff]  ;;  %v229_v21 = vld [vmem:[%s695_s5 + $0x20] sm:$0xff]  ;;  %v230_v22 = vld [vmem:[%s695_s5 + $0x28] sm:$0xff]  ;;  %v548_v2 = vmov 0.0  }
   0x8   :  { %530 = vmatprep.subr.msk.bf16.mxu0 %vm136_vm1, %v538_v4  ;;  %55 = vperm.xlu0 %534, %v41_v8   ;;  %v231_v23 = vld [vmem:[%s695_s5 + $0x30] sm:$0xff]  ;;  %v232_v24 = vld [vmem:[%s695_s5 + $0x38] sm:$0xff]  ;;  %v384_v25 = vld [vmem:[%s696_s6] sm:$0x3] }
   0x9   :  { %65 = vperm.xlu1 %535, %v43_v9   ;;  %v543_v26 = vld [vmem:[%s697_s2] sm:$0xff]   ;;  %v544_v63 = vld [vmem:[%s697_s2 + $0x8] sm:$0xff]   ;;  %v545_v0 = vld [vmem:[%s697_s2 + $0x10] sm:$0xff]  }
   0xa   :  { %510 = vmatprep.mubr.msk.bf16.mxu1 %vm293_vm2, %v543_v26  ;;  %v546_v1 = vld [vmem:[%s697_s2 + $0x18] sm:$0xff]  }
   0xb   :  { %493 = vmatpush3.bf16.msra.mxu0 %v138_v7 }
   0xc   :  { %70 = vperm.xlu0 %534, %v44_v12   ;;  %518 = vmatprep.subr.bf16.mxu0 %v548_v2 }
   0xd   :  { %75 = vperm.xlu1 %535, %v45_v13  }
   0xe   :  { %495 = vmatmul.mubr.msk.bf16.vlgmr.msra.gmra.mrb[0].mxu0 %vm123_vm0, %v540_v10 }
   0xf   :  { %498 = vmatprep.mubr.msk.bf16.mxu0 %vm123_vm0, %v541_v11 }
  0x10   :  { %80 = vperm.xlu0 %534, %v46_v14  }
  0x11   :  { %85 = vperm.xlu1 %535, %v47_v15  }
  0x14   :  { %235 = vperm.xlu0 %534, %v225_v17  }
  0x15   :  { %240 = vperm.xlu1 %535, %v226_v18  }
  0x16   :  { %499 = vmatmul.mubr.msk.bf16.gmra.mrb[4].mxu0 %vm123_vm0, %v542_v16 }
  0x17   :  { %526 = vmatprep.mubr.msk.bf16.mxu0 %vm549_vm3, %v548_v2 }
  0x18   :  { %245 = vperm.xlu0 %534, %v227_v19  }
  0x19   :  { %250 = vperm.xlu1 %535, %v228_v20  }
  0x1c   :  { %255 = vperm.xlu0 %534, %v229_v21  }
  0x1d   :  { %260 = vperm.xlu1 %535, %v230_v22  }
  0x20   :  { %265 = vperm.xlu0 %534, %v231_v23  }
  0x21   :  { %270 = vperm.xlu1 %535, %v232_v24  }
  0x24   :  { %387 = vperm.xlu0 %534, %v384_v25  }
  0x83   :  { %v51_v27 = vpop.permute.xlu0 %50 }
  0x84   :  { %v61_v28 = vpop.permute.xlu1 %60 }
  0x87   :  { %v56_v29 = vpop.permute.xlu0 %55 }
  0x88   :  { %v66_v30 = vpop.permute.xlu1 %65 }
  0x8b   :  { %v71_v34 = vpop.permute.xlu0 %70 }
  0x8c   :  { %v76_v39 = vpop.permute.xlu1 %75 }
  0x8f   :  { %v81_v46 = vpop.permute.xlu0 %80 }
  0x90   :  { %v86_v51 = vpop.permute.xlu1 %85 }
  0x93   :  { %v236_v3 = vpop.permute.xlu0 %235 }
  0x94   :  { %v241_v4 = vpop.permute.xlu1 %240 }
  0x97   :  { %v246_v5 = vpop.permute.xlu0 %245 }
  0x98   :  { %v251_v6 = vpop.permute.xlu1 %250 }
  0x9b   :  { %v256_v10 = vpop.permute.xlu0 %255 }
  0x9c   :  { %v261_v15 = vpop.permute.xlu1 %260 }
  0x9f   :  { %v266_v22 = vpop.permute.xlu0 %265 }
  0xe1   :  { %v496_v31 = vpop.f32.mrb[0].mxu0 }
  0xe2   :  { %v183_v32 = vadd.f32 %v496_v31, %v61_v28  ;;  %v174_v33 = vpop.f32.mrb[1].mxu0 }
  0xe3   :  { %v175_v35 = vadd.f32 %v174_v33, %v51_v27  ;;  %v497_v36 = vpop.f32.mrb[2].mxu0  ;;  %v271_v27 = vpop.permute.xlu1 %270 }
  0xe4   :  { %v186_v37 = vadd.f32 %v497_v36, %v66_v30  ;;  %v177_v38 = vpop.f32.mrb[3].mxu0  ;;  %v207_v41 = vmax.f32 %v183_v32, 0.0 }
  0xe5   :  { %v178_v40 = vadd.f32 %v177_v38, %v56_v29  ;;  %v205_v43 = vmax.f32 %v175_v35, 0.0 }
  0xe6   :  { %v208_v42 = vmax.f32 %v186_v37, 0.0 }
  0xe7   :  { %v206_v44 = vmax.f32 %v178_v40, 0.0  ;;  %v388_v40 = vpop.permute.xlu0 %387 }
  0xe8   :  { %v214_v45 = vpack.c.bf16 %v208_v42, %v207_v41 }
  0xe9   :  { %v500_v47 = vpop.f32.mrb[4].mxu0  ;;  %v213_v48 = vpack.c.bf16 %v206_v44, %v205_v43 }
  0xea   :  { %v199_v49 = vadd.f32 %v500_v47, %v81_v46  ;;  %v190_v50 = vpop.f32.mrb[5].mxu0 }
  0xeb   :  { %v191_v52 = vadd.f32 %v190_v50, %v71_v34  ;;  %v501_v53 = vpop.f32.mrb[6].mxu0  ;;  %502 = vmatprep.subr.bf16.mxu1 %v213_v48 }
  0xec   :  { %v202_v54 = vadd.f32 %v501_v53, %v86_v51  ;;  %v193_v55 = vpop.f32.mrb[7].mxu0  ;;  %503 = vmatpush3.bf16.msra.mxu1 %v213_v48  ;;  %v211_v57 = vmax.f32 %v199_v49, 0.0 }
  0xed   :  { %v194_v56 = vadd.f32 %v193_v55, %v76_v39  ;;  %504 = vmatprep.subr.bf16.mxu1 %v214_v45  ;;  %v209_v59 = vmax.f32 %v191_v52, 0.0  ;;  %v383_v39 = vld [vmem:[%s698_s3] sm:$0x1] }
  0xee   :  { %v212_v58 = vmax.f32 %v202_v54, 0.0 }
  0xef   :  { %v210_v60 = vmax.f32 %v194_v56, 0.0 }
  0xf0   :  { %v216_v61 = vpack.c.bf16 %v212_v58, %v211_v57  ;;  %505 = vmatpush3.bf16.msra.mxu1 %v214_v45 }
  0xf1   :  { %v215_v62 = vpack.c.bf16 %v210_v60, %v209_v59 }
  0xf3   :  { %506 = vmatprep.subr.bf16.mxu1 %v215_v62 }
  0xf4   :  { %507 = vmatpush3.bf16.msra.mxu1 %v215_v62 }
  0xf5   :  { %508 = vmatprep.subr.bf16.mxu1 %v216_v61 }
  0xf8   :  { %509 = vmatpush3.bf16.msra.mxu1 %v216_v61 }
  0xfb   :  { %511 = vmatmul.mubr.msk.bf16.vlgmr.msra.gmra.mrb[0].mxu1 %vm293_vm2, %v544_v63 }
  0xfc   :  { %514 = vmatprep.mubr.msk.bf16.mxu1 %vm293_vm2, %v545_v0 }
 0x103   :  { %515 = vmatmul.mubr.msk.bf16.gmra.mrb[4].mxu1 %vm293_vm2, %v546_v1 }
 0x1ce   :  { %v512_v7 = vpop.f32.mrb[0].mxu1 }
 0x1cf   :  { %v349_v8 = vadd.f32 %v512_v7, %v246_v5  ;;  %v340_v9 = vpop.f32.mrb[1].mxu1 }
 0x1d0   :  { %v341_v11 = vadd.f32 %v340_v9, %v236_v3  ;;  %v513_v12 = vpop.f32.mrb[2].mxu1 }
 0x1d1   :  { %v352_v13 = vadd.f32 %v513_v12, %v251_v6  ;;  %v343_v14 = vpop.f32.mrb[3].mxu1  ;;  %v373_v17 = vmax.f32 %v349_v8, 0.0 }
 0x1d2   :  { %v344_v16 = vadd.f32 %v343_v14, %v241_v4  ;;  %v371_v19 = vmax.f32 %v341_v11, 0.0 }
 0x1d3   :  { %v374_v18 = vmax.f32 %v352_v13, 0.0 }
 0x1d4   :  { %v372_v20 = vmax.f32 %v344_v16, 0.0 }
 0x1d5   :  { %v380_v21 = vpack.c.bf16 %v374_v18, %v373_v17 }
 0x1d6   :  { %v379_v23 = vpack.c.bf16 %v372_v20, %v371_v19  ;;  %v516_v24 = vpop.f32.mrb[4].mxu1 }
 0x1d7   :  { %v365_v25 = vadd.f32 %v516_v24, %v266_v22  ;;  %v356_v26 = vpop.f32.mrb[5].mxu1 }
 0x1d8   :  { %v357_v28 = vadd.f32 %v356_v26, %v256_v10  ;;  %v517_v29 = vpop.f32.mrb[6].mxu1  ;;  %519 = vmatpush3.bf16.msra.mxu0 %v379_v23 }
 0x1d9   :  { %v368_v30 = vadd.f32 %v517_v29, %v271_v27  ;;  %v359_v31 = vpop.f32.mrb[7].mxu1  ;;  %520 = vmatprep.subr.bf16.mxu0 %v548_v2  ;;  %v377_v33 = vmax.f32 %v365_v25, 0.0 }
 0x1da   :  { %v360_v32 = vadd.f32 %v359_v31, %v261_v15  ;;  %v375_v35 = vmax.f32 %v357_v28, 0.0 }
 0x1db   :  { %v378_v34 = vmax.f32 %v368_v30, 0.0 }
 0x1dc   :  { %v376_v36 = vmax.f32 %v360_v32, 0.0  ;;  %521 = vmatpush3.bf16.msra.mxu0 %v380_v21 }
 0x1dd   :  { %v382_v37 = vpack.c.bf16 %v378_v34, %v377_v33  ;;  %522 = vmatprep.subr.bf16.mxu0 %v548_v2 }
 0x1de   :  { %v381_v38 = vpack.c.bf16 %v376_v36, %v375_v35 }
 0x1e0   :  { %523 = vmatpush3.bf16.msra.mxu0 %v381_v38 }
 0x1e1   :  { %524 = vmatprep.subr.bf16.mxu0 %v548_v2 }
 0x1e4   :  { %525 = vmatpush3.bf16.msra.mxu0 %v382_v37 }
 0x1e7   :  { %527 = vmatmul.mubr.msk.bf16.vlgmr.msra.gmra.mrb[8].mxu0 %vm293_vm2, %v383_v39 }
 0x2ba   :  { %v427_v41 = vpop.f32.mrb[8].mxu0 }
 0x2bb   :  { %v428_v42 = vadd.f32 %v427_v41, %v388_v40  ;;  %v528_v43 = vpop.f32.mrb[9].mxu0 }
 0x2bc   :  { %v430_v44 = vpop.f32.mrb[10].mxu0 }
 0x2bd   :  { %434 = vst.msk [vmem:[%s699_s7] sm:$0x3] %vm433_vm4, %v428_v42  ;;  %v435_v45 = vsel %vm433_vm4, %v428_v42, inf  ;;  %v529_v46 = vpop.f32.mrb[11].mxu0 }
 0x2be   :  { %v436_v47 = vrot.slane %v435_v45, 4 }
 0x2c0   :  { %v437_v48 = vmin.f32 %v435_v45, %v436_v47 }
 0x2c2   :  { %v438_v49 = vrot.slane %v437_v48, 2 }
 0x2c4   :  { %v439_v50 = vmin.f32 %v437_v48, %v438_v49 }
 0x2c6   :  { %v440_v51 = vrot.slane %v439_v50, 1 }
 0x2c8   :  { %v441_v52 = vmin.f32 %v439_v50, %v440_v51 }
 0x2ca   :  { %443 = vst.msk [vmem:[%s699_s7 + $0x2] sm:$0x1] %vm442_vm5, %v441_v52 }

</bundles_post_ra>
